<compile_context>
chip_gen: v6e
topology: v6e:2x2x1
jax: 0.10.0
libtpu: 0.0.40
codegen_flags: <defaults>
</compile_context>

<pallas_src>
import jax
import jax.numpy as jnp
from jax.experimental import pallas as pl
from jax.experimental.pallas import tpu as pltpu


BN_EPS = 1e-5
VMEM_TILE_BUDGET = 24 * 1024 * 1024   # conservative: fits v7x 32 MiB scoped default


def _round_up(n: int, m: int) -> int:
    return ((n + m - 1) // m) * m


def _pick_divisor_tile(total: int, tmax: int, step: int = 128) -> int:
    """Largest multiple of `step` <= tmax that divides `total` (total % step == 0)."""
    if total <= tmax:
        return total
    best = step
    t = step
    while t <= tmax:
        if total % t == 0:
            best = t
        t += step
    return best


def _pick_tm(batch: int, tmax: int, align: int) -> tuple[int, int]:
    """Pick (tm, padded_M) minimizing padded rows, tm multiple of `align`."""
    mp_min = _round_up(batch, align)
    if mp_min <= tmax:
        return mp_min, mp_min
    best_tm, best_mp = align, _round_up(mp_min, align)
    t = align
    while t <= tmax:
        mp = _round_up(mp_min, t)
        if mp < best_mp or (mp == best_mp and t > best_tm):
            best_tm, best_mp = t, mp
        t += align
    return best_tm, best_mp


# ----------------------------------------------------------------------------- kernels

def dense_block_kernel_fused(x_ref, w_ref, b_ref, o_ref):
    """Whole-K in one block: matmul + folded-BN bias + ReLU, single pass."""
    z = jnp.dot(x_ref[...], w_ref[...], preferred_element_type=jnp.float32)
    z = z + b_ref[...]
    o_ref[...] = jnp.maximum(z, 0.0).astype(o_ref.dtype)


def dense_block_kernel_ksplit(x_ref, w_ref, b_ref, o_ref):
    """K-split fallback: accumulate directly into the resident f32 output block."""
    k = pl.program_id(2)

    @pl.when(k == 0)
    def _():
        o_ref[...] = jnp.zeros_like(o_ref)

    o_ref[...] += jnp.dot(x_ref[...], w_ref[...],
                          preferred_element_type=jnp.float32)

    @pl.when(k == pl.num_programs(2) - 1)
    def _():
        o_ref[...] = jnp.maximum(o_ref[...] + b_ref[...], 0.0)


# ----------------------------------------------------------------------------- wrappers

def prepare_dense_block_params(w, b, gamma, beta, running_mean, running_var,
                               *, bn_eps=BN_EPS, compute_dtype=jnp.bfloat16):
    """One-time (model-load) prep: fold BN(eval)+bias into the linear params,
    transpose to MXU-native (in, out), pad to lane-aligned shapes, cast W to the
    matmul compute dtype.  Keep the results and reuse them every forward call."""
    out_size, in_size = w.shape
    scale = gamma.reshape(-1) * jax.lax.rsqrt(running_var.reshape(-1) + bn_eps)
    w_folded = (w * scale[:, None]).T                                  # (in, out)
    b_folded = ((b.reshape(-1) - running_mean.reshape(-1)) * scale
                + beta.reshape(-1)).reshape(1, out_size)

    kp = _round_up(in_size, 128)
    np_ = _round_up(out_size, 128)
    w_p = jnp.pad(w_folded, ((0, kp - in_size), (0, np_ - out_size))).astype(compute_dtype)
    b_p = jnp.pad(b_folded, ((0, 0), (0, np_ - out_size))).astype(jnp.float32)
    return w_p, b_p, out_size


def dense_block_apply(x, w_p, b_p, out_size, *, tm=512, tn=512, tk=512,
                      compute_dtype=jnp.bfloat16):
    """Forward pass.  w_p: (kp, np_) folded/padded weight, b_p: (1, np_) folded bias."""
    batch, in_size = x.shape
    kp, np_ = w_p.shape
    itemsize = jnp.dtype(compute_dtype).itemsize
    m_align = 16 if itemsize == 2 else (32 if itemsize == 1 else 8)

    # --- Tile selection ------------------------------------------------------
    tm, mp = _pick_tm(batch, tm, m_align)
    tn = _pick_divisor_tile(np_, tn)

    # v7x megacore: if the parallel (i, j) grid would be a single tile, split N
    # so both TensorCores get work (only when np_ allows a 128-aligned halving).
    if (mp // tm) * (np_ // tn) < 2 and np_ % 256 == 0:
        tn = min(tn, np_ // 2)

    # Whole-K in one block if double-buffered input tiles + resident f32 output
    # tile fit comfortably in VMEM; otherwise split K into 128-aligned chunks.
    whole_k_bytes = 2 * kp * (tm + tn) * itemsize + tm * tn * 4 + 2 * np_ * 4
    if whole_k_bytes <= VMEM_TILE_BUDGET:
        tk = kp
    else:
        tk = _pick_divisor_tile(kp, tk)

    # --- Activation padding / cast only when needed ---------------------------
    if mp != batch or kp != in_size:
        x_p = jnp.pad(x, ((0, mp - batch), (0, kp - in_size)))
    else:
        x_p = x
    if x_p.dtype != compute_dtype:
        x_p = x_p.astype(compute_dtype)

    cost = pl.CostEstimate(
        flops=2 * mp * np_ * kp,
        transcendentals=0,
        bytes_accessed=(mp * kp + kp * np_) * itemsize + np_ * 4 + mp * np_ * 4)

    grid_k = kp // tk
    if grid_k == 1:
        out = pl.pallas_call(
            dense_block_kernel_fused,
            out_shape=jax.ShapeDtypeStruct((mp, np_), jnp.float32),
            grid=(mp // tm, np_ // tn),
            in_specs=[
                pl.BlockSpec((tm, kp), lambda i, j: (i, 0)),   # x tile (whole K)
                pl.BlockSpec((kp, tn), lambda i, j: (0, j)),   # folded weight tile
                pl.BlockSpec((1, tn), lambda i, j: (0, j)),    # folded bias slice
            ],
            out_specs=pl.BlockSpec((tm, tn), lambda i, j: (i, j)),
            compiler_params=pltpu.CompilerParams(
                dimension_semantics=("parallel", "parallel"),
                vmem_limit_bytes=32 * 1024 * 1024),
            cost_estimate=cost,
        )(x_p, w_p, b_p)
    else:
        out = pl.pallas_call(
            dense_block_kernel_ksplit,
            out_shape=jax.ShapeDtypeStruct((mp, np_), jnp.float32),
            grid=(mp // tm, np_ // tn, grid_k),
            in_specs=[
                pl.BlockSpec((tm, tk), lambda i, j, k: (i, k)),
                pl.BlockSpec((tk, tn), lambda i, j, k: (k, j)),
                pl.BlockSpec((1, tn), lambda i, j, k: (0, j)),
            ],
            out_specs=pl.BlockSpec((tm, tn), lambda i, j, k: (i, j)),
            compiler_params=pltpu.CompilerParams(
                dimension_semantics=("parallel", "parallel", "arbitrary"),
                vmem_limit_bytes=32 * 1024 * 1024),
            cost_estimate=cost,
        )(x_p, w_p, b_p)

    if mp != batch or np_ != out_size:
        out = out[:batch, :out_size]
    return out


def dense_block(x, w, b, gamma, beta, running_mean, running_var,
                *, bn_eps=BN_EPS, compute_dtype=jnp.bfloat16):
    """Convenience one-shot wrapper (prep + apply).  For real inference call
    prepare_dense_block_params once and reuse w_p/b_p across forward calls."""
    w_p, b_p, out_size = prepare_dense_block_params(
        w, b, gamma, beta, running_mean, running_var,
        bn_eps=bn_eps, compute_dtype=compute_dtype)
    return dense_block_apply(x, w_p, b_p, out_size, compute_dtype=compute_dtype)


def reference(x, w, b, gamma, beta, running_mean, running_var):
    z = x @ w.T + b
    z = (z - running_mean) * jax.lax.rsqrt(running_var + BN_EPS) * gamma + beta
    return jnp.maximum(z, 0.0)


if __name__ == "__main__":
    in_size, out_size, batch = 32, 64, 8

    key = jax.random.PRNGKey(0)
    kx, kw, kb, kg, kbeta, km, kv = jax.random.split(key, 7)

    x = jax.random.normal(kx, (batch, in_size), dtype=jnp.float32)

    # Deterministic "parameter init" mimicking nn.Linear(in_size, out_size)
    # (uniform in [-1/sqrt(in), 1/sqrt(in)]) and a non-trivial BatchNorm1d state.
    bound = 1.0 / jnp.sqrt(jnp.float32(in_size))
    w = jax.random.uniform(kw, (out_size, in_size), jnp.float32, -bound, bound)
    b = jax.random.uniform(kb, (1, out_size), jnp.float32, -bound, bound)
    gamma = 1.0 + 0.1 * jax.random.normal(kg, (1, out_size), jnp.float32)
    beta = 0.1 * jax.random.normal(kbeta, (1, out_size), jnp.float32)
    running_mean = 0.1 * jax.random.normal(km, (1, out_size), jnp.float32)
    running_var = 1.0 + 0.1 * jax.random.uniform(kv, (1, out_size), jnp.float32)

    # Model-load-time prep (hoisted out of the per-call path), then forward.
    w_p, b_p, osz = prepare_dense_block_params(
        w, b, gamma, beta, running_mean, running_var)
    out = dense_block_apply(x, w_p, b_p, osz)
    out = jax.block_until_ready(out)

    ref = reference(x, w, b, gamma, beta, running_mean, running_var)
    assert out.shape == (batch, out_size)
    # bf16 matmul inputs with f32 accumulation: loose tolerance vs. f32 reference.
    assert jnp.allclose(out, ref, atol=5e-2, rtol=5e-2), "mismatch vs reference"

    print("KERNEL_OK")
</pallas_src>

<mosaic_0001>
module attributes {stable_mosaic.version = 11 : i64} {
  func.func @dense_block_kernel_fused(%arg0: i32, %arg1: i32, %arg2: memref<16x128xbf16, #tpu.memory_space<vmem>>, %arg3: memref<128x128xbf16, #tpu.memory_space<vmem>>, %arg4: memref<1x128xf32, #tpu.memory_space<vmem>>, %arg5: memref<16x128xf32, #tpu.memory_space<vmem>>) attributes {dimension_semantics = [#tpu.dimension_semantics<parallel>, #tpu.dimension_semantics<parallel>], iteration_bounds = array<i64: 1, 1>, scalar_prefetch = 0 : i64, scratch_operands = 0 : i64, tpu.core_type = #tpu.core_type<tc>, window_params = [{transform_indices = @transform_0, window_bounds = array<i64: 16, 128>}, {transform_indices = @transform_1, window_bounds = array<i64: 128, 128>}, {transform_indices = @transform_2, window_bounds = array<i64: 1, 128>}, {transform_indices = @transform_3, window_bounds = array<i64: 16, 128>}]} {
    %c0 = arith.constant 0 : index
    %c0_0 = arith.constant 0 : index
    %0 = vector.load %arg2[%c0, %c0_0] : memref<16x128xbf16, #tpu.memory_space<vmem>>, vector<16x128xbf16>
    %c0_1 = arith.constant 0 : index
    %c0_2 = arith.constant 0 : index
    %1 = vector.load %arg3[%c0_1, %c0_2] : memref<128x128xbf16, #tpu.memory_space<vmem>>, vector<128x128xbf16>
    %cst = arith.constant dense<0.000000e+00> : vector<16x128xf32>
    %2 = tpu.matmul %0, %1, %cst {dimension_numbers = #tpu.dot_dimension_numbers<[1], [0], [0], [1], [0, 0, 1, 1], [], []>} : vector<16x128xbf16>, vector<128x128xbf16>, vector<16x128xf32> -> vector<16x128xf32>
    %c0_3 = arith.constant 0 : index
    %c0_4 = arith.constant 0 : index
    %3 = vector.load %arg4[%c0_3, %c0_4] : memref<1x128xf32, #tpu.memory_space<vmem>>, vector<1x128xf32>
    %4 = vector.broadcast %3 : vector<1x128xf32> to vector<16x128xf32>
    %5 = arith.addf %2, %4 : vector<16x128xf32>
    %cst_5 = arith.constant 0.000000e+00 : f32
    %6 = vector.broadcast %cst_5 : f32 to vector<16x128xf32>
    %7 = arith.maximumf %5, %6 : vector<16x128xf32>
    %c0_6 = arith.constant 0 : index
    %c0_7 = arith.constant 0 : index
    %8 = vector.load %arg5[%c0_6, %c0_7] : memref<16x128xf32, #tpu.memory_space<vmem>>, vector<16x128xf32>
    tpu.vector_store %arg5[%c0_6, %c0_7], %7 {strides = array<i32>} : memref<16x128xf32, #tpu.memory_space<vmem>>, vector<16x128xf32>,
    return
  }
  func.func @transform_0(%arg0: i32, %arg1: i32) -> (i32, i32) {
    %c0_i32 = arith.constant 0 : i32
    %c0_i32_0 = arith.constant 0 : i32
    return %arg0, %c0_i32 : i32, i32
  }
  func.func @transform_1(%arg0: i32, %arg1: i32) -> (i32, i32) {
    %c0_i32 = arith.constant 0 : i32
    %c0_i32_0 = arith.constant 0 : i32
    return %c0_i32, %arg1 : i32, i32
  }
  func.func @transform_2(%arg0: i32, %arg1: i32) -> (i32, i32) {
    %c0_i32 = arith.constant 0 : i32
    %c0_i32_0 = arith.constant 0 : i32
    return %c0_i32, %arg1 : i32, i32
  }
  func.func @transform_3(%arg0: i32, %arg1: i32) -> (i32, i32) {
    %c0_i32 = arith.constant 0 : i32
    return %arg0, %arg1 : i32, i32
  }
}

</mosaic_0001>

<bundles_post_ra>
// kernel: tpu_custom_call.1
= control target key start
LH: loop header
LB: loop body
LE: loop exit
PB: predicated region body
PF: predicated region fallthrough
CT: control target
= control target key end

     0   :  { %8 = vsyncpa [#allocation3], 0  ;;  %s350_s0 = inlined_call_operand.hbm [shape: bf16[16,128], index: 0, kind: input, shape index: {}]   ;;  %s351_s1 = inlined_call_operand.hbm [shape: bf16[128,128], index: 1, kind: input, shape index: {}]   ;;  %s352_s2 = inlined_call_operand.vmem [shape: f32[1,128], index: 2, kind: input, shape index: {}]   ;;  %s353_s3 = inlined_call_operand.hbm [shape: f32[16,128], index: 3, kind: output, shape index: {}]  }
   0x1   :  { %9 = vsyncpa [#allocation6], 0 }
   0x2   :  { %10 = vsyncpa [#allocation4], 0  ;;  %s309_s12 = smov [#allocation2]  }
   0x3   :  { %s16_s13 = sshll.u32 %s309_s12, 4  ;;  %s17_s13 = int_to_ptr.vmem [resolvable:$true] %s16_s13 }
   0x4   :  { %s251_s14 = scalar_lea.vmem %s17_s13, 128  ;;  %p256_p1 = scmp.lt.s32.totalorder %s17_s13, %s17_s13 }
   0x5   :  { %p252_p0 = scmp.ne.s32.totalorder %s17_s13, %s251_s14  ;;  %p257_p2 = scmp.lt.s32.totalorder %s251_s14, %s251_s14 }
   0x7   :  { %p258_p3 = por %p257_p2, %p256_p1 }
   0x9   :  { %p259_p4 = pnand %p258_p3, %p252_p0 }
   0xb   :  { %262 = shalt.err (!%p259_p4)
}
   0xc   :  { %s310_s15 = smov 64   ;;  %s311_s16 = smov 4  }
   0xd   :  { %22 = dma.hbm_to_vmem [thread:$0]  %s350_s0, 128, %s17_s13, [#allocation3], %s310_s15, %s310_s15, %s311_s16  }
   0xe   :  { %s312_s19 = smov [#allocation5]  }
   0xf   :  { %s28_s20 = sshll.u32 %s312_s19, 4  ;;  %s29_s20 = int_to_ptr.vmem [resolvable:$true] %s28_s20 }
  0x10   :  { %s271_s21 = scalar_lea.vmem %s29_s20, 1024  ;;  %p276_p6 = scmp.lt.s32.totalorder %s29_s20, %s29_s20 }
  0x11   :  { %p272_p5 = scmp.ne.s32.totalorder %s29_s20, %s271_s21  ;;  %p277_p7 = scmp.lt.s32.totalorder %s271_s21, %s271_s21 }
  0x13   :  { %p278_p8 = por %p277_p7, %p276_p6 }
  0x15   :  { %p279_p9 = pnand %p278_p8, %p272_p5 }
  0x17   :  { %282 = shalt.err (!%p279_p9)
}
  0x18   :  { %34 = dma.hbm_to_vmem [thread:$0]  %s351_s1, 1024, %s29_s20, [#allocation6], %s310_s15, %s310_s15, %s311_s16  }
  0x19   :  { %303 = dma.done.wait [#allocation3], 128  }
  0x1a   :  { %304 = vsyncadd [#allocation3], 4294967168 }
  0x1b   :  { %305 = dma.done.wait [#allocation6], 1024  }
  0x1c   :  { %306 = vsyncadd [#allocation6], 4294966272  ;;  %v313_v0 = vmov 0.0   ;;  %vm314_vm0 = vmmov 0   ;;  %v234_v1 = vld [vmem:[#allocation5 + $0x38] sm:$0xff]   ;;  %v235_v2 = vld [vmem:[#allocation5 + $0x30] sm:$0xff]  }
  0x1d   :  { %205 = vmatprep.subr.bf16.mxu0 %v313_v0  ;;  %221 = vmatprep.mubr.msk.bf16.mxu0 %vm314_vm0, %v313_v0  ;;  %v236_v3 = vld [vmem:[#allocation5 + $0x28] sm:$0xff]   ;;  %v237_v4 = vld [vmem:[#allocation5 + $0x20] sm:$0xff]   ;;  %v238_v5 = vld [vmem:[#allocation5 + $0x18] sm:$0xff]   ;;  %s315_s24 = smov [#allocation7]  }
  0x1e   :  { %206 = vmatpush3.bf16.msra.mxu0 %v234_v1  ;;  %v239_v6 = vld [vmem:[#allocation5 + $0x10] sm:$0xff]   ;;  %v240_v7 = vld [vmem:[#allocation5 + $0x8] sm:$0xff]   ;;  %v241_v8 = vld [vmem:[#allocation5] sm:$0xff]   ;;  %s173_s25 = sshll.u32 %s315_s24, 4  ;;  %s174_s25 = int_to_ptr.vmem [resolvable:$true] %s173_s25 }
  0x1f   :  { %207 = vmatprep.subr.bf16.mxu0 %v313_v0  ;;  %v242_v9 = vld [vmem:[#allocation2] sm:$0xff]   ;;  %s283_s26 = scalar_lea.vmem %s174_s25, 256  ;;  %p288_p11 = scmp.lt.s32.totalorder %s174_s25, %s174_s25 }
  0x20   :  { %v186_v10 = vld [vmem:[%s352_s2] ss:$0 sm:$0xff]  ;;  %p284_p10 = scmp.ne.s32.totalorder %s174_s25, %s283_s26  ;;  %p289_p12 = scmp.lt.s32.totalorder %s283_s26, %s283_s26 }
  0x22   :  { %208 = vmatpush3.bf16.msra.mxu0 %v235_v2  ;;  %p290_p13 = por %p289_p12, %p288_p11 }
  0x23   :  { %209 = vmatprep.subr.bf16.mxu0 %v313_v0 }
  0x24   :  { %p291_p0 = pnand %p290_p13, %p284_p10 }
  0x26   :  { %210 = vmatpush3.bf16.msra.mxu0 %v236_v3 }
  0x27   :  { %211 = vmatprep.subr.bf16.mxu0 %v313_v0 }
  0x2a   :  { %212 = vmatpush3.bf16.msra.mxu0 %v237_v4 }
  0x2b   :  { %213 = vmatprep.subr.bf16.mxu0 %v313_v0 }
  0x2e   :  { %214 = vmatpush3.bf16.msra.mxu0 %v238_v5 }
  0x2f   :  { %215 = vmatprep.subr.bf16.mxu0 %v313_v0 }
  0x32   :  { %216 = vmatpush3.bf16.msra.mxu0 %v239_v6 }
  0x33   :  { %217 = vmatprep.subr.bf16.mxu0 %v313_v0 }
  0x36   :  { %218 = vmatpush3.bf16.msra.mxu0 %v240_v7 }
  0x37   :  { %219 = vmatprep.subr.bf16.mxu0 %v313_v0 }
  0x3a   :  { %220 = vmatpush3.bf16.msra.mxu0 %v241_v8 }
  0x3d   :  { %222 = vmatmul.mubr.bf16.vlgmr.msra.gmra.mxu0 %v242_v9 }
  0xfd   :  { %v157_v11 = vpop.f32.mrf.mxu0 }
  0xfe   :  { %v158_v12 = vadd.f32 %v186_v10, %v157_v11 }
  0xff   :  { %v223_v13 = vpop.f32.mrf.mxu0 }
 0x100   :  { %v164_v14 = vmax.f32 %v158_v12, 0.0 }
 0x101   :  { %v160_v15 = vpop.f32.mrf.mxu0 }
 0x102   :  { %166 = vst [vmem:[#allocation7] sm:$0xff] %v164_v14  ;;  %v161_v16 = vadd.f32 %v186_v10, %v160_v15 }
 0x103   :  { %v224_v17 = vpop.f32.mrf.mxu0 }
 0x104   :  { %v165_v18 = vmax.f32 %v161_v16, 0.0 }
 0x106   :  { %167 = vst [vmem:[#allocation7 + $0x8] sm:$0xff] %v165_v18 }
 0x107   :  { %294 = shalt.err (!%p291_p0)
}
 0x108   :  { %s316_s2 = smov 128   ;;  %s317_s27 = smov 8  }
 0x109   :  { %179 = dma.vmem_to_hbm [thread:$0]  %s174_s25, 256, %s353_s3, [#allocation4], %s316_s2, %s316_s2, %s317_s27  }
 0x10a   :  { %307 = dma.done.wait [#allocation4], 256  }
 0x10b   :  { %308 = vsyncadd [#allocation4], 4294967040 }
 0x10c   :  { %183 = vsyncpa [#allocation3], 1 }
 0x10d   :  { %184 = vsyncpa [#allocation6], 1 }
 0x10e   :  { %185 = vsyncpa [#allocation4], 1 }

</bundles_post_ra>
